<compile_context>
chip_gen: v7x
topology: tpu7x:2x2x1
jax: 0.10.0
libtpu: 0.0.40
codegen_flags: <defaults>
</compile_context>

<pallas_src>
import functools

import jax
import jax.numpy as jnp
from jax import lax
from jax.experimental import pallas as pl
from jax.experimental.pallas import tpu as pltpu


def _reduce_sum_kernel(a_ref, o_ref, acc_ref, *, rows_total, tr, need_mask):
    # a_ref:   (TB, TR, C) input tile in VMEM
    # o_ref:   (TB, 1, 1)  output block (same block across the row axis)
    # acc_ref: (TB, 1, C)  lane-dense f32 accumulator scratch
    r = pl.program_id(1)

    @pl.when(r == 0)
    def _init():
        acc_ref[...] = jnp.zeros_like(acc_ref)

    x = a_ref[...].astype(jnp.float32)
    if need_mask:
        # Ragged tail tile: rows beyond rows_total hold unspecified padding.
        row_idx = r * tr + lax.broadcasted_iota(jnp.int32, x.shape, 1)
        x = jnp.where(row_idx < rows_total, x, 0.0)

    # Steady state: reduce only the sublane/row axis, keep C lanes dense.
    acc_ref[...] += jnp.sum(x, axis=1, keepdims=True)

    @pl.when(r == pl.num_programs(1) - 1)
    def _finalize():
        # One cross-lane reduction + tiny store per batch tile.
        o_ref[...] = jnp.sum(acc_ref[...], axis=2, keepdims=True).astype(o_ref.dtype)


def _cdiv(a: int, b: int) -> int:
    return -(-a // b)


def _largest_divisor_at_most(n: int, cap: int) -> int:
    cap = max(1, min(n, cap))
    for d in range(cap, 0, -1):
        if n % d == 0:
            return d
    return 1


def _choose_layout_and_tiles(B: int, M: int, N: int, itemsize: int, budget_bytes: int):
    """Pick the (B, R, C) view and (TB, TR) tiles for the reduction."""
    K = M * N
    if K % 128 == 0:
        # Lane-dense view: every vreg row uses all 128 lanes.
        R, C = K // 128, 128
    else:
        # Fallback: keep the original layout (N < 128 wastes lanes, but such
        # shapes are usually small and hit the fast path).
        R, C = M, N

    padded_c = _cdiv(C, 128) * 128
    row_bytes = padded_c * itemsize
    slab_padded = _cdiv(R, 8) * 8 * row_bytes  # padded per-batch-element bytes

    if slab_padded <= budget_bytes:
        # Whole per-batch slab fits: batch TB elements per grid step.
        TR = R
        tb_cap = max(1, budget_bytes // max(slab_padded, 1))
        if B >= 2:
            # Keep >= 2 steps on the "parallel" axis so both v7x cores run.
            tb_cap = min(tb_cap, B // 2)
        TB = _largest_divisor_at_most(B, tb_cap)
    else:
        # Slab too large: tile the row axis in multiples of 8 (f32 sublane tile).
        TB = 1
        tr_cap = max(8, (budget_bytes // max(row_bytes, 1)) // 8 * 8)
        TR = min(R, tr_cap)

    n_b = B // TB
    n_r = _cdiv(R, TR)
    need_mask = (R % TR) != 0
    return R, C, TB, TR, n_b, n_r, need_mask


def reduce_sum_keepdim(a: jax.Array,
                       vmem_budget_per_buffer_bytes: int = 8 << 20,
                       min_kernel_bytes: int = 256 << 10) -> jax.Array:
    """sum over dims (1, 2) with keepdim=True, via a Pallas TPU kernel."""
    B, M, N = a.shape
    itemsize = jnp.dtype(a.dtype).itemsize
    total_bytes = B * M * N * itemsize

    # Fast path: for tiny inputs the pallas_call fixed overhead dominates.
    if total_bytes < min_kernel_bytes or B == 0 or M * N == 0:
        return jnp.sum(a, axis=(1, 2), keepdims=True)

    R, C, TB, TR, n_b, n_r, need_mask = _choose_layout_and_tiles(
        B, M, N, itemsize, vmem_budget_per_buffer_bytes)

    a3 = a.reshape(B, R, C)  # free: contiguous memory, pure relabeling

    # Scoped VMEM: double-buffered input block (padded layout) + small margin.
    padded_block_bytes = TB * _cdiv(TR, 8) * 8 * _cdiv(C, 128) * 128 * itemsize
    vmem_limit = max(2 * padded_block_bytes + (2 << 20), 4 << 20)

    cost = pl.CostEstimate(
        flops=B * M * N,
        transcendentals=0,
        bytes_accessed=total_bytes + B * itemsize,
    )

    kernel = functools.partial(
        _reduce_sum_kernel, rows_total=R, tr=TR, need_mask=need_mask)

    return pl.pallas_call(
        kernel,
        out_shape=jax.ShapeDtypeStruct((B, 1, 1), a.dtype),
        grid_spec=pltpu.PrefetchScalarGridSpec(
            num_scalar_prefetch=0,
            # Reduction (row) axis last, marked "arbitrary" below.
            grid=(n_b, n_r),
            in_specs=[
                pl.BlockSpec((TB, TR, C), lambda b, r: (b, r, 0)),
            ],
            # Same output block across the row axis -> resident accumulator.
            out_specs=pl.BlockSpec((TB, 1, 1), lambda b, r: (b, 0, 0)),
            scratch_shapes=[pltpu.VMEM((TB, 1, C), jnp.float32)],
        ),
        compiler_params=pltpu.CompilerParams(
            dimension_semantics=("parallel", "arbitrary"),
            vmem_limit_bytes=int(vmem_limit),
        ),
        cost_estimate=cost,
    )(a3)


if __name__ == "__main__":
    key = jax.random.PRNGKey(0)

    # 1) Small shape consistent with the module's (-1, -1, -1) float32 input.
    #    Force the kernel path (M*N = 512 is a multiple of 128 -> dense layout).
    B, M, N = 2, 16, 32
    a = jax.random.normal(key, (B, M, N), dtype=jnp.float32)
    ref = jnp.sum(a, axis=(1, 2), keepdims=True)
    out = jax.block_until_ready(reduce_sum_keepdim(a, min_kernel_bytes=0))
    assert out.shape == (B, 1, 1), out.shape
    assert jnp.allclose(out, ref, rtol=1e-5, atol=1e-4), (out, ref)

    # 2) Default call takes the small-input fast path; result must match too.
    out_fast = jax.block_until_ready(reduce_sum_keepdim(a))
    assert jnp.allclose(out_fast, ref, rtol=1e-5, atol=1e-4), (out_fast, ref)

    # 3) Multi-step reduction with a ragged tail (R = 15 rows, TR = 8, masked).
    B2, M2, N2 = 2, 24, 80  # M*N = 1920 = 15 * 128
    a2 = jax.random.normal(jax.random.PRNGKey(1), (B2, M2, N2), dtype=jnp.float32)
    ref2 = jnp.sum(a2, axis=(1, 2), keepdims=True)
    out2 = jax.block_until_ready(
        reduce_sum_keepdim(a2, vmem_budget_per_buffer_bytes=4096,
                           min_kernel_bytes=0))
    assert out2.shape == (B2, 1, 1), out2.shape
    assert jnp.allclose(out2, ref2, rtol=1e-5, atol=1e-4), (out2, ref2)

    # 4) Fallback layout (M*N not a multiple of 128): keeps the (M, N) view.
    B3, M3, N3 = 2, 16, 33
    a3 = jax.random.normal(jax.random.PRNGKey(2), (B3, M3, N3), dtype=jnp.float32)
    ref3 = jnp.sum(a3, axis=(1, 2), keepdims=True)
    out3 = jax.block_until_ready(reduce_sum_keepdim(a3, min_kernel_bytes=0))
    assert out3.shape == (B3, 1, 1), out3.shape
    assert jnp.allclose(out3, ref3, rtol=1e-5, atol=1e-4), (out3, ref3)

    print("KERNEL_OK")
</pallas_src>

<mosaic_0001>
module attributes {stable_mosaic.version = 11 : i64} {
  func.func @_reduce_sum_kernel(%arg0: i32, %arg1: i32, %arg2: memref<1x4x128xf32, #tpu.memory_space<vmem>>, %arg3: memref<1x1x1xf32, #tpu.memory_space<vmem>>, %arg4: memref<1x1x128xf32, #tpu.memory_space<vmem>>) attributes {dimension_semantics = [#tpu.dimension_semantics<parallel>, #tpu.dimension_semantics<arbitrary>], iteration_bounds = array<i64: 2, 1>, scalar_prefetch = 0 : i64, scratch_operands = 1 : i64, tpu.core_type = #tpu.core_type<tc>, window_params = [{transform_indices = @transform_0, window_bounds = array<i64: 1, 4, 128>}, {transform_indices = @transform_1, window_bounds = array<i64: 1, 1, 1>}]} {
    %c0_i32 = arith.constant 0 : i32
    %0 = arith.cmpi eq, %arg1, %c0_i32 : i32
    %1 = arith.extui %0 : i1 to i32
    %c0_i32_0 = arith.constant 0 : i32
    %2 = arith.cmpi ne, %1, %c0_i32_0 : i32
    scf.if %2 {
      %cst_11 = arith.constant 0.000000e+00 : f32
      %12 = vector.broadcast %cst_11 : f32 to vector<1x1x128xf32>
      %c0_12 = arith.constant 0 : index
      %c0_13 = arith.constant 0 : index
      %c0_14 = arith.constant 0 : index
      %13 = vector.load %arg4[%c0_12, %c0_13, %c0_14] : memref<1x1x128xf32, #tpu.memory_space<vmem>>, vector<1x1x128xf32>
      tpu.vector_store %arg4[%c0_12, %c0_13, %c0_14], %12 {strides = array<i32>} : memref<1x1x128xf32, #tpu.memory_space<vmem>>, vector<1x1x128xf32>,
    } else {
    }
    %c0 = arith.constant 0 : index
    %c0_1 = arith.constant 0 : index
    %c0_2 = arith.constant 0 : index
    %3 = vector.load %arg2[%c0, %c0_1, %c0_2] : memref<1x4x128xf32, #tpu.memory_space<vmem>>, vector<1x4x128xf32>
    %c0_3 = arith.constant 0 : index
    %c0_4 = arith.constant 0 : index
    %c0_5 = arith.constant 0 : index
    %4 = vector.load %arg4[%c0_3, %c0_4, %c0_5] : memref<1x1x128xf32, #tpu.memory_space<vmem>>, vector<1x1x128xf32>
    %cst = arith.constant dense<0.000000e+00> : vector<1x128xf32>
    %5 = vector.multi_reduction <add>, %3, %cst [1] : vector<1x4x128xf32> to vector<1x128xf32>
    %6 = vector.shape_cast %5 : vector<1x128xf32> to vector<1x1x128xf32>
    %7 = arith.addf %4, %6 : vector<1x1x128xf32>
    %c0_6 = arith.constant 0 : index
    %c0_7 = arith.constant 0 : index
    %c0_8 = arith.constant 0 : index
    %8 = vector.load %arg4[%c0_6, %c0_7, %c0_8] : memref<1x1x128xf32, #tpu.memory_space<vmem>>, vector<1x1x128xf32>
    tpu.vector_store %arg4[%c0_6, %c0_7, %c0_8], %7 {strides = array<i32>} : memref<1x1x128xf32, #tpu.memory_space<vmem>>, vector<1x1x128xf32>,
    %c0_i32_9 = arith.constant 0 : i32
    %9 = arith.cmpi eq, %arg1, %c0_i32_9 : i32
    %10 = arith.extui %9 : i1 to i32
    %c0_i32_10 = arith.constant 0 : i32
    %11 = arith.cmpi ne, %10, %c0_i32_10 : i32
    scf.if %11 {
      %c0_11 = arith.constant 0 : index
      %c0_12 = arith.constant 0 : index
      %c0_13 = arith.constant 0 : index
      %12 = vector.load %arg4[%c0_11, %c0_12, %c0_13] : memref<1x1x128xf32, #tpu.memory_space<vmem>>, vector<1x1x128xf32>
      %cst_14 = arith.constant dense<0.000000e+00> : vector<1x1xf32>
      %13 = vector.multi_reduction <add>, %12, %cst_14 [2] : vector<1x1x128xf32> to vector<1x1xf32>
      %14 = vector.shape_cast %13 : vector<1x1xf32> to vector<1x1x1xf32>
      %c0_15 = arith.constant 0 : index
      %c0_16 = arith.constant 0 : index
      %c0_17 = arith.constant 0 : index
      %15 = vector.load %arg3[%c0_15, %c0_16, %c0_17] : memref<1x1x1xf32, #tpu.memory_space<vmem>>, vector<1x1x1xf32>
      tpu.vector_store %arg3[%c0_15, %c0_16, %c0_17], %14 {strides = array<i32>} : memref<1x1x1xf32, #tpu.memory_space<vmem>>, vector<1x1x1xf32>,
    } else {
    }
    return
  }
  func.func @transform_0(%arg0: i32, %arg1: i32) -> (i32, i32, i32) {
    %c0_i32 = arith.constant 0 : i32
    %c0_i32_0 = arith.constant 0 : i32
    return %arg0, %arg1, %c0_i32 : i32, i32, i32
  }
  func.func @transform_1(%arg0: i32, %arg1: i32) -> (i32, i32, i32) {
    %c0_i32 = arith.constant 0 : i32
    %c0_i32_0 = arith.constant 0 : i32
    %c0_i32_1 = arith.constant 0 : i32
    return %arg0, %c0_i32, %c0_i32_0 : i32, i32, i32
  }
}

</mosaic_0001>

<bundles_post_ra>
// kernel: tpu_custom_call.1
= control target key start
LH: loop header
LB: loop body
LE: loop exit
PB: predicated region body
PF: predicated region fallthrough
CT: control target
= control target key end

     0   :  { %6 = vsyncpa [#allocation4], 0  ;;  %s525_s0 = inlined_call_operand.hbm [shape: f32[2,4,128], index: 0, kind: input, shape index: {}]   ;;  %s526_s1 = inlined_call_operand.vmem [shape: f32[2,1,1], index: 1, kind: output, shape index: {}]  }
   0x1   :  { %8 = vsyncpa [#allocation4 + $0x1], 0  ;;  %s400_s6 = smov 0   ;;  %s402_s7 = smov 0  }
   0x2   :  { %s404_s8 = smov 0   ;;  %s406_s9 = smov 0  }
   0x3   :  { %s408_s10 = smov 0   ;;  %s410_s11 = smov 0  }
   0x4 LB: > { %s240_s12 = sadd.s32 4294967295, %s386_s11   ;;  %s26_s13 = sadd.s32 1, %s382_s10  ;;  %s386_s11 = sphi %s410_s11, %s14_s11   ;;  %s382_s10 = sphi %s408_s10, %s536_s10   ;;  %s378_s9 = sphi %s406_s9, %s535_s9   ;;  %s374_s8 = sphi %s404_s8, %s534_s8   ;;  %s370_s7 = sphi %s402_s7, %s533_s7   ;;  %s366_s6 = sphi %s400_s6, %s532_s6  }
   0x5   : > { %p28_p0 = scmp.ge.s32.totalorder %s26_s13, 2  ;;  %s35_s14 = sadd.s32 1, %s374_s8 }
   0x6   : > { %p42_p1 = scmp.ne.s32.totalorder %s374_s8, %s370_s7  ;;  %p43_p2 = scmp.eq.s32.totalorder %s386_s11, 0 }
   0x7   : > { %s538_s13 = smov (%p28_p0, %s26_s13), 0  ;;  %p48_p4 = scmp.ne.s32.totalorder %s370_s7, %s366_s6 }
   0x8   : > { %p436_p3 = por %p43_p2, %p42_p1  ;;  %s30_s16 = ssub.s32 %s382_s10, %s538_s13 }
   0x9   : > { %p49_p5 = scmp.eq.s32.totalorder %s240_s12, 0  ;;  %p33_p6 = scmp.eq.s32.totalorder %s30_s16, 0 }
   0xa   : > { %p256_p8 = scmp.lt.s32.totalorder %s386_s11, 2  ;;  %s98_s19 = sand.u32 1, %s374_s8  }
   0xb   : > { %p443_p7 = por %p49_p5, %p48_p4  ;;  %s245_s20 = sshll.u32 %s382_s10, 6 }
   0xc   : > { %s449_s18 = scalar_select %p33_p6, %s374_s8, %s35_s14  }
   0xd   : > { %s244_s21 = sshll.u32 %s98_s19, 2  ;;  %s456_s24 = scalar_lea.hbm %s525_s0, %s245_s20 }
   0xe   : > { %s102_s25 = scalar_lea.vmem [#allocation3], %s244_s21  ;;  %p460_p9 = pnand %p256_p8, %p436_p3 }
   0xf   : > { %s110_s26 = sshll.u32 %s102_s25, 4  ;;  %s99_s28 = scalar_lea.sflag [#allocation4], %s98_s19  ;;  %s464_s26 = int_to_ptr.vmem [resolvable:$true] %s110_s26 }
  0x10   : > { %s306_s29 = scalar_lea.hbm %s456_s24, 64  ;;  %p308_p13 = pneg %p460_p9 }
  0x11   : > { %p307_p12 = scmp.ne.s32.totalorder %s456_s24, %s306_s29  ;;  %s311_s3 = scalar_lea.hbm %s525_s0, 128 }
  0x12   : > { %p312_p2 = scmp.lt.u32.totalorder %s456_s24, %s525_s0  ;;  %p313_p3 = scmp.lt.u32.totalorder %s311_s3, %s306_s29 }
  0x13   : > { %p309_p0 = pnand %p308_p13, %p307_p12  ;;  %p315_p5 = scmp.lt.u32.totalorder %s306_s29, %s456_s24 }
  0x14   : > { %p314_p4 = por %p313_p3, %p312_p2 }
  0x15   : > { %p310_p1 = pneg %p309_p0 }
  0x16   : > { %p316_p6 = por %p315_p5, %p314_p4 }
  0x18   : > { %p317_p8 = pnand %p316_p6, %p310_p1 }
  0x1a   : > { %320 = shalt.err (!%p317_p8)
}
  0x1b   : > { %s321_s6 = scalar_lea.vmem %s464_s26, 64  ;;  %s388_s12 = smov [#allocation3]  }
  0x1c   : > { %p322_p12 = scmp.ne.s32.totalorder %s464_s26, %s321_s6  ;;  %s326_s14 = sshll.u32 %s388_s12, 4  ;;  %s327_s14 = int_to_ptr.vmem [resolvable:$false] %s326_s14 }
  0x1d   : > { %s328_s15 = scalar_lea.vmem %s327_s14, 128  ;;  %p329_p11 = scmp.lt.s32.totalorder %s464_s26, %s327_s14 }
  0x1e   : > { %p324_p0 = pnand %p322_p12, %p308_p13  ;;  %p330_p2 = scmp.lt.s32.totalorder %s328_s15, %s321_s6 }
  0x20   : > { %p325_p10 = pneg %p324_p0  ;;  %p331_p3 = por %p330_p2, %p329_p11 }
  0x22   : > { %p332_p4 = pnand %p331_p3, %p325_p10 }
  0x24   : > { %335 = shalt.err (!%p332_p4)
}
  0x25   : > { %255 = dma.hbm_to_vmem [thread:$0]  (!%p460_p9), %s456_s24, 64, %s464_s26, %s99_s28  }
  0x26   : > { %p530_p1 = scmp.lt.s32.totalorder %s386_s11, 3  ;;  %p531_p5 = scmp.ge.s32.totalorder %s386_s11, 1 }
  0x28   : > { %p116_p13 = pnand %p531_p5, %p530_p1 }
  0x29   : > { %s121_s16 = sand.u32 (!%p116_p13), 1, %s370_s7  }
  0x2a   : > { %119 = sbr.rel (%p116_p13) target bundleno = 218 (0xda), region = 24  ;;  %s247_s19 = sshll.u32 (!%p116_p13), %s121_s16, 2 }
  0x2b   : > { %s122_s20 = scalar_lea.sflag (!%p116_p13), [#allocation4], %s121_s16  ;;  %s125_s21 = scalar_lea.vmem (!%p116_p13), [#allocation3], %s247_s19 }
  0x31   : > { %361 = dma.done.wait (%p443_p7), %s122_s20, 64  }
  0x32   : > { %363 = vsyncadd (%p443_p7), %s122_s20, 4294967232  ;;  %v389_v0 = vmov 0.0   ;;  %vm152_vm0 = vcmask 1043456   ;;  %v150_v1 = vld [vmem:[%s125_s21] sm:$0xf]  ;;  %vm166_vm1 = vcmask 1040384  }
  0x33   : > { %149 = vst [vmem:[#allocation2] sm:$0x1] %v389_v0  ;;  %v153_v2 = vsel %vm152_vm0, %v150_v1, 0.0  ;;  %p142_p7 = scmp.lt.s32.totalorder %s378_s9, 1  ;;  %vm170_vm2 = vcmask 0  }
  0x34   : > { %v154_v3 = vrot.slane %v153_v2, 4 }
  0x35   : > { %s540_s9 = smov (!%p142_p7, %s378_s9), 1 }
  0x36   : > { %v155_v4 = vadd.f32 %v154_v3, %v153_v2  ;;  %s144_s23 = scalar_lea.vmem %s526_s1, %s540_s9 }
  0x38   : > { %v156_v5 = vrot.slane %v155_v4, 2 }
  0x3a   : > { %v157_v6 = vadd.f32 %v156_v5, %v155_v4  ;;  %v151_v8 = vld [vmem:[#allocation2] sm:$0x1] }
  0x3c   : > { %v158_v7 = vrot.slane %v157_v6, 1 }
  0x3e   : > { %v159_v9 = vadd.f32 %v158_v7, %v157_v6 }
  0x40   : > { %v160_v10 = vadd.f32 %v159_v9, %v151_v8 }
  0x42   : > { %161 = vst [vmem:[#allocation2] sm:$0x1] %v160_v10 }
  0x49   : > { %v165_v11 = vld [vmem:[#allocation2] sm:$0x1] }
  0x4a   : > { %v167_v12 = vsel %vm166_vm1, %v165_v11, 0.0 }
  0x4b   : > { %168 = vadd.xlane.f32.xlu0 %v167_v12 }
  0xd8   : > { %v169_v13 = vpop.xlane.xlu0 %168 }
  0xd9   : > { %171 = vst.msk [vmem:[%s144_s23] sm:$0x1] %vm170_vm2, %v169_v13 }
  0xda PF: > { %s14_s11 = sadd.s32 1, %s386_s11   ;;  %s532_s6 = smov %s370_s7 }
  0xdb   : > { %p11_p9 = scmp.ge.s32.totalorder %s14_s11, 4   ;;  %s533_s7 = smov %s374_s8 }
  0xdc   : > { %s534_s8 = smov %s449_s18  ;;  %s535_s9 = smov %s382_s10 }
  0xdd   : > { %s536_s10 = smov %s538_s13  ;;  %13 = sbr.rel (!%p11_p9) target bundleno = 4 (0x4), region = 72 }
  0xe4   :  { %189 = vsyncpa [#allocation4], 1 }
  0xe5   :  { %191 = vsyncpa [#allocation4 + $0x1], 1 }

</bundles_post_ra>
